<compile_context>
chip_gen: v6e
topology: v6e:2x2x1
jax: 0.10.0
libtpu: 0.0.40
codegen_flags: <defaults>
</compile_context>

<pallas_src>
import functools

import jax
import jax.numpy as jnp
from jax.experimental import pallas as pl
from jax.experimental.pallas import tpu as pltpu

F32 = jnp.float32
BF16 = jnp.bfloat16


# ---------------------------------------------------------------------------
# generic helpers
# ---------------------------------------------------------------------------
def _full_spec(shape):
    n = len(shape)
    return pl.BlockSpec(shape, lambda *args, _n=n: (0,) * _n)


@functools.lru_cache(maxsize=None)
def _vmem_limit_bytes():
    """Generation-aware VMEM budget (v7x only has 64 MiB physical VMEM)."""
    cap = 128 * 1024 * 1024
    try:
        info = pltpu.get_tpu_info()
        cap = int(getattr(info, "vmem_capacity_bytes", cap) or cap)
    except Exception:
        pass
    return min(int(cap * 3 // 4), 100 * 1024 * 1024)


def _pick_tm(M, bn):
    # TODO(synk): bn=True keeps M untiled (single-pass batch stats); a two-pass
    # cross-tile BN would be needed to tile M for very large B*L.
    if bn:
        return M
    for tm in (1024, 512, 256, 128):
        if M % tm == 0 and M // tm >= 2:
            return tm
    return M


def _pick_tk(K, tm, N):
    """Largest K tile (multiple of 128 dividing K) whose working set fits VMEM."""
    budget = max(int(_vmem_limit_bytes() * 0.6), 8 * 1024 * 1024)

    def need(tk):
        # double-buffered bf16 x/w tiles + f32 output block + f32 scratch acc
        return 2 * (tm * tk * 2) + 2 * (tk * N * 2) + 2 * (tm * N * 4) + N * 4

    if K % 128 != 0 or need(K) <= budget:
        return K
    for d in range(K // 128, 0, -1):
        tk = d * 128
        if K % tk == 0 and need(tk) <= budget:
            return tk
    return K


# ---------------------------------------------------------------------------
# Kernel 1: M/K-tiled bf16 matmul with fused bias / scale / BN(train) / ReLU /
#   dropout (precomputed uniforms) / L2-row-norm epilogue.
#   K-tiled runs accumulate into an f32 VMEM scratch; output is written once.
# ---------------------------------------------------------------------------
def _matmul_kernel(*refs, nk, add_bias, scale, bn, relu, dropout_p, l2norm,
                   bn_eps, l2_eps, use_acc):
    x_ref, w_ref, b_ref = refs[0], refs[1], refs[2]
    pos = 3
    u_ref = None
    if dropout_p > 0.0:
        u_ref = refs[pos]
        pos += 1
    o_ref = refs[pos]
    pos += 1
    acc_ref = refs[pos] if use_acc else None

    k = pl.program_id(1)
    part = jnp.dot(x_ref[...], w_ref[...], preferred_element_type=jnp.float32)

    def epilogue(y):
        if add_bias:
            y = y + b_ref[...]
        if scale != 1.0:
            y = y * scale
        if bn:  # BatchNorm1d, training mode: biased stats over rows (= batch*len)
            mu = jnp.mean(y, axis=0, keepdims=True)
            var = jnp.mean((y - mu) ** 2, axis=0, keepdims=True)
            y = (y - mu) * jax.lax.rsqrt(var + bn_eps)
        if relu:
            y = jnp.maximum(y, 0.0)
        if dropout_p > 0.0:  # inverted dropout with a precomputed uniform mask
            y = jnp.where(u_ref[...] >= dropout_p,
                          y * (1.0 / (1.0 - dropout_p)), jnp.zeros_like(y))
        if l2norm:  # F.normalize over the channel (lane) dim, eps clamp on the norm
            ss = jnp.sum(y * y, axis=1, keepdims=True)
            y = y * jax.lax.rsqrt(jnp.maximum(ss, l2_eps * l2_eps))
        return y

    if not use_acc:
        o_ref[...] = epilogue(part).astype(o_ref.dtype)
    else:
        @pl.when(k == 0)
        def _():
            acc_ref[...] = part

        @pl.when(jnp.logical_and(k > 0, k < nk - 1))
        def _():
            acc_ref[...] += part

        @pl.when(k == nk - 1)
        def _():
            o_ref[...] = epilogue(acc_ref[...] + part).astype(o_ref.dtype)


def matmul_fused(x, wt, bias=None, scale=1.0, bn=False, relu=False,
                 dropout_p=0.0, dropout_u=None, l2norm=False, out_dtype=F32,
                 bn_eps=1e-5, l2_eps=1e-12):
    """out = post(x @ wt [+ bias]); x:(M,K), wt:(K,N).  MXU runs in bf16."""
    M, K = x.shape
    K2, N = wt.shape
    assert K == K2
    tm = _pick_tm(M, bn)
    nm = M // tm
    tk = _pick_tk(K, tm, N)
    nk = K // tk
    b = (bias.reshape(1, N).astype(F32) if bias is not None
         else jnp.zeros((1, N), F32))

    args = [x.astype(BF16), wt.astype(BF16), b]
    in_specs = [pl.BlockSpec((tm, tk), lambda i, k: (i, k)),
                pl.BlockSpec((tk, N), lambda i, k: (k, 0)),
                pl.BlockSpec((1, N), lambda i, k: (0, 0))]
    if dropout_p > 0.0:
        assert dropout_u is not None and dropout_u.shape == (M, N)
        args.append(dropout_u.astype(F32))
        in_specs.append(pl.BlockSpec((tm, N), lambda i, k: (i, 0)))

    scratch = [pltpu.VMEM((tm, N), F32)] if nk > 1 else []
    kern = functools.partial(
        _matmul_kernel, nk=nk, add_bias=bias is not None, scale=float(scale),
        bn=bn, relu=relu, dropout_p=float(dropout_p), l2norm=l2norm,
        bn_eps=bn_eps, l2_eps=l2_eps, use_acc=(nk > 1))
    return pl.pallas_call(
        kern,
        out_shape=jax.ShapeDtypeStruct((M, N), out_dtype),
        grid=(nm, nk),
        in_specs=in_specs,
        out_specs=pl.BlockSpec((tm, N), lambda i, k: (i, 0)),
        scratch_shapes=scratch,
        compiler_params=pltpu.CompilerParams(
            dimension_semantics=("parallel", "arbitrary"),
            vmem_limit_bytes=_vmem_limit_bytes()),
    )(*args)


# ---------------------------------------------------------------------------
# Kernel 2: FAT module fused with the double sequence softmax.
#   Per batch block (L, C) rows: y = x @ w + b; softmax(y/T, seq); softmax(seq).
# ---------------------------------------------------------------------------
def _fat_softmax_kernel(x_ref, w_ref, b_ref, o_ref, *, inv_temp):
    y = (jnp.dot(x_ref[...], w_ref[...], preferred_element_type=jnp.float32)
         + b_ref[...]) * inv_temp
    m = jnp.max(y, axis=0, keepdims=True)
    e = jnp.exp(y - m)
    s1 = e / jnp.sum(e, axis=0, keepdims=True)
    m2 = jnp.max(s1, axis=0, keepdims=True)
    e2 = jnp.exp(s1 - m2)
    o_ref[...] = (e2 / jnp.sum(e2, axis=0, keepdims=True)).astype(o_ref.dtype)


def fat_double_softmax(x_rows, wt, bias, batch, seqlen, inv_temp):
    M, K = x_rows.shape
    N = wt.shape[1]
    assert M == batch * seqlen
    return pl.pallas_call(
        functools.partial(_fat_softmax_kernel, inv_temp=float(inv_temp)),
        out_shape=jax.ShapeDtypeStruct((M, N), BF16),
        grid=(batch,),
        in_specs=[pl.BlockSpec((seqlen, K), lambda b: (b, 0)),
                  pl.BlockSpec((K, N), lambda b: (0, 0)),
                  pl.BlockSpec((1, N), lambda b: (0, 0))],
        out_specs=pl.BlockSpec((seqlen, N), lambda b: (b, 0)),
        compiler_params=pltpu.CompilerParams(
            dimension_semantics=("parallel",),
            vmem_limit_bytes=_vmem_limit_bytes()),
    )(x_rows.astype(BF16), wt.astype(BF16), bias.reshape(1, N).astype(F32))


# ---------------------------------------------------------------------------
# Kernel 3: MSF module collapsed: relu(bn(a@Wa + b@Wb + bias)), where
#   Wa = w1.T @ wf[:, :512].T and Wb = w2.T @ wf[:, 512:].T are precomputed
#   (the conv1/conv2 matmuls are folded into conv_fusion -- no nonlinearity
#   between them in the reference).
# ---------------------------------------------------------------------------
def _msf_fusion_kernel(a_ref, b_ref, wa_ref, wb_ref, bias_ref, o_ref, *, eps):
    y = jnp.dot(a_ref[...], wa_ref[...], preferred_element_type=jnp.float32)
    y = y + jnp.dot(b_ref[...], wb_ref[...], preferred_element_type=jnp.float32)
    y = y + bias_ref[...]
    mu = jnp.mean(y, axis=0, keepdims=True)
    var = jnp.mean((y - mu) ** 2, axis=0, keepdims=True)
    y = (y - mu) * jax.lax.rsqrt(var + eps)
    o_ref[...] = jnp.maximum(y, 0.0)


def msf_fusion_bn_relu(a, b2, wa, wb, bias, eps=1e-5):
    M, _ = a.shape
    N = wa.shape[1]
    args = (a.astype(BF16), b2.astype(BF16),
            wa.astype(BF16), wb.astype(BF16),
            bias.reshape(1, N).astype(F32))
    # TODO(synk): BN(train) needs full-M stats, so this stays a single grid
    # step; a two-pass BN would enable M tiling / 2-TC sharding on v7x.
    return pl.pallas_call(
        functools.partial(_msf_fusion_kernel, eps=eps),
        out_shape=jax.ShapeDtypeStruct((M, N), F32),
        grid=(1,),
        in_specs=[_full_spec(x.shape) for x in args],
        out_specs=_full_spec((M, N)),
        compiler_params=pltpu.CompilerParams(
            dimension_semantics=("arbitrary",),
            vmem_limit_bytes=_vmem_limit_bytes()),
    )(*args)


# ---------------------------------------------------------------------------
# Kernel 4: fused DEG module (per batch).  No im2col in HBM: the 27 dilated
#   taps are static shifted windows of a zero-padded VMEM block.  Fuses:
#   relu(mean of the three dilated convs) -> FC1 (1x1) -> residual (x+y)/2 ->
#   two dropout(0.01) masks -> spatial means.
# ---------------------------------------------------------------------------
def _deg_fused_kernel(xpad_ref, xrows_ref, u1_ref, u2_ref, wtap_ref, wfc1_ref,
                      bfc1_ref, m1_ref, m2_ref, *, H, W, C, Cop, taps, drop_p):
    acc = jnp.zeros((H * W, Cop), jnp.float32)
    for t, (oy, ox) in enumerate(taps):
        win = xpad_ref[0, oy:oy + H, ox:ox + W, :].reshape(H * W, C)
        acc = acc + jnp.dot(win, wtap_ref[t], preferred_element_type=jnp.float32)
    y = jnp.maximum(acc, 0.0)                        # relu((FC11+FC12+FC13)/3)
    z = (jnp.dot(y.astype(BF16), wfc1_ref[...], preferred_element_type=jnp.float32)
         + bfc1_ref[...])                            # FC1 (1x1 conv)
    base = (z + xrows_ref[0]) * 0.5                  # (x1 + x) / 2
    inv_keep = 1.0 / (1.0 - drop_p)
    o1 = jnp.where(u1_ref[0] >= drop_p, base * inv_keep, jnp.zeros_like(base))
    o2 = jnp.where(u2_ref[0] >= drop_p, base * inv_keep, jnp.zeros_like(base))
    m1_ref[0] = jnp.mean(o1, axis=0, keepdims=True)
    m2_ref[0] = jnp.mean(o2, axis=0, keepdims=True)


def deg_module(part_features, p, key1, key2):
    """DEG_module(768, flag=True): returns spatial means of (out1, out2)."""
    B, C, H, W = part_features.shape
    HW = H * W
    Co = p['w11'].shape[0]                           # 192
    Cop = ((Co + 127) // 128) * 128                  # pad to 256 -> full MXU tiles

    x_nhwc = jnp.transpose(part_features, (0, 2, 3, 1))
    xpad = jnp.pad(x_nhwc, ((0, 0), (3, 3), (3, 3), (0, 0))).astype(BF16)
    xrows = x_nhwc.reshape(B, HW, C).astype(F32)
    u1 = jax.random.uniform(key1, (B, HW, C), F32)
    u2 = jax.random.uniform(key2, (B, HW, C), F32)

    # stack per-tap weights (27, C, Cop) = [dil1 taps, dil2 taps, dil3 taps],
    # scaled by 1/3 (mean of the three convs folded into the weights).
    ws = []
    for name in ('w11', 'w12', 'w13'):
        wconv = p[name]                              # (Co, C, 3, 3)
        for ky in range(3):
            for kx in range(3):
                wt = jnp.transpose(wconv[:, :, ky, kx], (1, 0)) * (1.0 / 3.0)
                ws.append(jnp.pad(wt, ((0, 0), (0, Cop - Co))))
    wtap = jnp.stack(ws, axis=0).astype(BF16)        # (27, C, Cop)
    wfc1 = jnp.pad(p['wfc1'].T, ((0, Cop - Co), (0, 0))).astype(BF16)  # (Cop, C)
    bfc1 = p['bfc1'].reshape(1, C).astype(F32)

    taps = tuple((3 + (ky - 1) * d, 3 + (kx - 1) * d)
                 for d in (1, 2, 3) for ky in range(3) for kx in range(3))

    # TODO(synk): the full (27,C,Cop) tap-weight stack stays VMEM-resident; for
    # much larger C this would need a K-style grid axis over taps.
    m1, m2 = pl.pallas_call(
        functools.partial(_deg_fused_kernel, H=H, W=W, C=C, Cop=Cop,
                          taps=taps, drop_p=0.01),
        out_shape=(jax.ShapeDtypeStruct((B, 1, C), F32),
                   jax.ShapeDtypeStruct((B, 1, C), F32)),
        grid=(B,),
        in_specs=[pl.BlockSpec((1, H + 6, W + 6, C), lambda b: (b, 0, 0, 0)),
                  pl.BlockSpec((1, HW, C), lambda b: (b, 0, 0)),
                  pl.BlockSpec((1, HW, C), lambda b: (b, 0, 0)),
                  pl.BlockSpec((1, HW, C), lambda b: (b, 0, 0)),
                  pl.BlockSpec((27, C, Cop), lambda b: (0, 0, 0)),
                  pl.BlockSpec((Cop, C), lambda b: (0, 0)),
                  pl.BlockSpec((1, C), lambda b: (0, 0))],
        out_specs=(pl.BlockSpec((1, 1, C), lambda b: (b, 0, 0)),
                   pl.BlockSpec((1, 1, C), lambda b: (b, 0, 0))),
        compiler_params=pltpu.CompilerParams(
            dimension_semantics=("parallel",),
            vmem_limit_bytes=_vmem_limit_bytes()),
    )(xpad, xrows, u1, u2, wtap, wfc1, bfc1)
    return m1[:, 0, :], m2[:, 0, :]


# ---------------------------------------------------------------------------
# Kernel 5: batched ClassBlock heads, fully fused (grid over heads):
#   MultiScaleFusionDilated (dilated branches collapsed through the avg-pool,
#   extra1 kept nonlinear) + BatchNorm1d(train) + Dropout(0.5) + classifier.
#   Returns post-dropout features AND logits (matches ClassBlock.return_f).
# ---------------------------------------------------------------------------
def _heads_kernel(x_ref, w123_ref, b123_ref, w4_ref, b4_ref, u_ref,
                  wcls_ref, bcls_ref, feat_ref, logit_ref,
                  *, eps, feat_len, drop_p):
    x = x_ref[0]                                     # (B, L)
    w123 = w123_ref[0]                               # (3 dil, 3 tap, C)
    b123 = b123_ref[0]                               # (3, C)
    L = feat_len
    S = jnp.sum(x, axis=1, keepdims=True)            # (B, 1)
    parts = []
    for di, d in enumerate((1, 2, 3)):
        head = jnp.sum(x[:, :d], axis=1, keepdims=True)
        tail = jnp.sum(x[:, L - d:], axis=1, keepdims=True)
        m0 = (S - tail) * (1.0 / L)                  # tap 0 window mean
        m1 = S * (1.0 / L)                           # tap 1 window mean
        m2 = (S - head) * (1.0 / L)                  # tap 2 window mean
        y = (m0 * w123[di, 0][None, :] + m1 * w123[di, 1][None, :]
             + m2 * w123[di, 2][None, :] + b123[di][None, :])           # (B, C)
        parts.append(y)
    # extra1 branch: Conv1d(1->C, k=1) + ReLU (nonlinear -> full (B, L, C) path)
    w4 = w4_ref[0][0]                                # (C,)
    b4 = b4_ref[0][0]                                # (C,)
    z = x[:, :, None] * w4[None, None, :] + b4[None, None, :]           # (B, L, C)
    parts.append(jnp.mean(jnp.maximum(z, 0.0), axis=1))                 # (B, C)
    feat = jnp.concatenate(parts, axis=1)            # (B, 4C)
    # BatchNorm1d(4C), training mode, gamma=1 beta=0
    mu = jnp.mean(feat, axis=0, keepdims=True)
    var = jnp.mean((feat - mu) ** 2, axis=0, keepdims=True)
    feat = (feat - mu) * jax.lax.rsqrt(var + eps)
    # Dropout(0.5) -- reference returns post-dropout features
    feat = jnp.where(u_ref[0] >= drop_p, feat * (1.0 / (1.0 - drop_p)),
                     jnp.zeros_like(feat))
    feat_ref[0] = feat
    logit_ref[0] = (jnp.dot(feat.astype(BF16), wcls_ref[0],
                            preferred_element_type=jnp.float32)
                    + bcls_ref[0])


def heads_forward(x_stack, head_params, u_drop, num_classes):
    Hn, B, L = x_stack.shape
    C = head_params[0]['w1'].shape[0]                # 128
    Np = max(128, ((num_classes + 127) // 128) * 128)

    def wd(p, name):  # (C,1,3) -> (3, C)
        return jnp.transpose(p[name][:, 0, :], (1, 0))

    w123 = jnp.stack([jnp.stack([wd(p, 'w1'), wd(p, 'w2'), wd(p, 'w3')], 0)
                      for p in head_params], 0).astype(F32)              # (H,3,3,C)
    b123 = jnp.stack([jnp.stack([p['b1'], p['b2'], p['b3']], 0)
                      for p in head_params], 0).astype(F32)              # (H,3,C)
    w4 = jnp.stack([p['w4'][:, 0, 0] for p in head_params],
                   0)[:, None, :].astype(F32)                            # (H,1,C)
    b4 = jnp.stack([p['b4'] for p in head_params],
                   0)[:, None, :].astype(F32)                            # (H,1,C)
    wcls = jnp.stack([jnp.pad(p['wcls'], ((0, 0), (0, Np - num_classes)))
                      for p in head_params], 0).astype(BF16)             # (H,512,Np)
    bcls = jnp.stack([jnp.pad(p['bcls'], (0, Np - num_classes))
                      for p in head_params], 0)[:, None, :].astype(F32)  # (H,1,Np)

    feats, logits = pl.pallas_call(
        functools.partial(_heads_kernel, eps=1e-5, feat_len=int(L), drop_p=0.5),
        out_shape=(jax.ShapeDtypeStruct((Hn, B, 4 * C), F32),
                   jax.ShapeDtypeStruct((Hn, B, Np), F32)),
        grid=(Hn,),
        in_specs=[pl.BlockSpec((1, B, L), lambda h: (h, 0, 0)),
                  pl.BlockSpec((1, 3, 3, C), lambda h: (h, 0, 0, 0)),
                  pl.BlockSpec((1, 3, C), lambda h: (h, 0, 0)),
                  pl.BlockSpec((1, 1, C), lambda h: (h, 0, 0)),
                  pl.BlockSpec((1, 1, C), lambda h: (h, 0, 0)),
                  pl.BlockSpec((1, B, 4 * C), lambda h: (h, 0, 0)),
                  pl.BlockSpec((1, 512, Np), lambda h: (h, 0, 0)),
                  pl.BlockSpec((1, 1, Np), lambda h: (h, 0, 0))],
        out_specs=(pl.BlockSpec((1, B, 4 * C), lambda h: (h, 0, 0)),
                   pl.BlockSpec((1, B, Np), lambda h: (h, 0, 0))),
        compiler_params=pltpu.CompilerParams(
            dimension_semantics=("parallel",),
            vmem_limit_bytes=_vmem_limit_bytes()),
    )(x_stack.astype(F32), w123, b123, w4, b4, u_drop.astype(F32), wcls, bcls)
    return feats, logits[:, :, :num_classes]


# ---------------------------------------------------------------------------
# Modules built from the kernels
# ---------------------------------------------------------------------------
def backbone_stub(x_nchw, p):
    # TODO(synk): real timm convnext_tiny backbone not translated; stubbed with a
    # Pallas patch-embed projection (patch 4x4 -> 768 ch) + global average pool.
    B, Cin, H, W = x_nchw.shape
    P = 4
    h, w = H // P, W // P
    xp = x_nchw.reshape(B, Cin, h, P, w, P)
    xp = jnp.transpose(xp, (0, 2, 4, 1, 3, 5)).reshape(B * h * w, Cin * P * P)
    rows = matmul_fused(xp, p['wp'], bias=p['bp'])                  # (B*h*w, 768)
    part = jnp.transpose(rows.reshape(B, h, w, 768), (0, 3, 1, 2))  # NCHW
    gap = jnp.mean(rows.reshape(B, h * w, 768), axis=1)             # (B, 768)
    return gap, part


# ---------------------------------------------------------------------------
# build_convnext forward (training=True, return_f=True)
# ---------------------------------------------------------------------------
def build_convnext_forward(params, x, key, block=2):
    gap_feature, part_features = backbone_stub(x, params['backbone'])
    B, C, H, Wd = part_features.shape
    L = H * Wd
    dkeys = jax.random.split(key, 4)

    # pfeat = part_features.flatten(2) -> rows layout (B*L, C)
    pfeat_rows = jnp.transpose(part_features, (0, 2, 3, 1)).reshape(B * L, C)
    pfeat_bf = pfeat_rows.astype(BF16)

    # ----- proj: SparseMLP1D (1x1 conv -> BN -> ReLU -> 1x1 conv -> dropout) ----
    h = matmul_fused(pfeat_bf, params['proj']['w0'].T, bn=True, relu=True,
                     out_dtype=BF16)                                     # (BL,1536)
    # dropout(0.05) and F.normalize(dim=1) fused into the matmul epilogue.
    # TODO(synk): dropout masks use jax.random, not bit-identical to torch RNG.
    u_proj = jax.random.uniform(dkeys[0], (B * L, 256), F32)
    w_rows = matmul_fused(h, params['proj']['w1'].T, dropout_p=0.05,
                          dropout_u=u_proj, l2norm=True, out_dtype=BF16)  # (BL,256)

    # ----- FAT module (1x1 conv) + softmax(W/T, dim=seq) + outer softmax, fused -
    w_sm = fat_double_softmax(w_rows, params['fat']['w'].T, params['fat']['b'],
                              batch=B, seqlen=L, inv_temp=1.0 / 0.1)      # (BL,256)

    # ----- MSF module, algebraically collapsed (conv1/conv2 folded into wf) -----
    wf = params['msf']['wf']                                              # (512,1024)
    wa = jnp.dot(params['msf']['w1'].T, wf[:, :512].T)                    # (768,512)
    wb = jnp.dot(params['msf']['w2'].T, wf[:, 512:].T)                    # (256,512)
    bias_comb = (params['msf']['bf']
                 + jnp.dot(params['msf']['b1'], wf[:, :512].T)
                 + jnp.dot(params['msf']['b2'], wf[:, 512:].T))           # (512,)
    align_rows = msf_fusion_bn_relu(pfeat_bf, w_sm, wa, wb, bias_comb)    # (BL,512)
    pfeat_align = jnp.transpose(align_rows.reshape(B, L, 512), (0, 2, 1))  # (B,512,L)

    # ----- DEG module (fully fused) + batched ClassBlock heads -----
    m1, m2 = deg_module(part_features, params['deg'], dkeys[1], dkeys[2])
    head_params = [params[f'classifier_mcb{i + 1}'] for i in range(block)] \
                  + [params['classifier1']]
    head_inputs = jnp.stack([m1, m2][:block] + [gap_feature], axis=0)     # (H,B,768)
    num_classes = params['classifier1']['wcls'].shape[1]
    u_heads = jax.random.uniform(dkeys[3], (block + 1, B, 512), F32)
    feats, logits = heads_forward(head_inputs, head_params, u_heads, num_classes)

    cls = [logits[i] for i in range(block + 1)]
    features = [feats[i] for i in range(block + 1)]
    return pfeat_align, cls, features, gap_feature, part_features


# ---------------------------------------------------------------------------
# deterministic parameter initialization (shapes from the module __init__)
# TODO(synk): BN layers carry no affine gamma/beta or running stats here; this
# matches PyTorch init (gamma=1, beta=0, training-mode batch stats).
# ---------------------------------------------------------------------------
def init_params(key, num_classes, block=2):
    keys = iter(jax.random.split(key, 64))

    def w(shape, scale=0.05):
        return jax.random.normal(next(keys), shape, F32) * scale

    def classblock_params():
        return {'w1': w((128, 1, 3)), 'b1': w((128,), 0.01),
                'w2': w((128, 1, 3)), 'b2': w((128,), 0.01),
                'w3': w((128, 1, 3)), 'b3': w((128,), 0.01),
                'w4': w((128, 1, 1)), 'b4': w((128,), 0.01),
                'wcls': w((512, num_classes)), 'bcls': jnp.zeros((num_classes,), F32)}

    p = {
        'backbone': {'wp': w((48, 768)), 'bp': w((768,), 0.01)},
        'proj': {'w0': w((1536, 768)), 'w1': w((256, 1536))},          # bias=False
        'fat': {'w': w((256, 256)), 'b': w((256,), 0.01)},
        'msf': {'w1': w((512, 768)), 'b1': w((512,), 0.01),
                'w2': w((512, 256)), 'b2': w((512,), 0.01),
                'wf': w((512, 1024)), 'bf': w((512,), 0.01)},
        'deg': {'w11': w((192, 768, 3, 3)), 'w12': w((192, 768, 3, 3)),
                'w13': w((192, 768, 3, 3)),
                'wfc1': w((768, 192)), 'bfc1': jnp.zeros((768,), F32)},
        'classifier1': classblock_params(),
    }
    for i in range(block):
        p[f'classifier_mcb{i + 1}'] = classblock_params()
    return p


if __name__ == "__main__":
    key = jax.random.PRNGKey(0)
    pkey, xkey, dkey = jax.random.split(key, 3)

    num_classes = 10
    # block=2: the reference training path indexes tri_features[0..block-1] but
    # DEG_module(flag=True) returns a 2-tuple, so block>2 crashes in the original.
    block = 2

    params = init_params(pkey, num_classes, block=block)
    x = jax.random.normal(xkey, (2, 3, 32, 32), F32)   # NCHW images, small

    outs = build_convnext_forward(params, x, dkey, block=block)
    outs = jax.block_until_ready(outs)
    pfeat_align, cls, features, gap_feature, part_features = outs

    assert pfeat_align.shape == (2, 512, 64)
    assert gap_feature.shape == (2, 768)
    assert part_features.shape == (2, 768, 8, 8)
    assert len(cls) == block + 1 and all(c.shape == (2, num_classes) for c in cls)
    assert all(f.shape == (2, 512) for f in features)
    assert all(bool(jnp.all(jnp.isfinite(c))) for c in cls)
    assert bool(jnp.all(jnp.isfinite(pfeat_align)))

    print("KERNEL_OK")
</pallas_src>

<mosaic_0001>
module attributes {stable_mosaic.version = 11 : i64} {
  func.func @_matmul_kernel(%arg0: i32, %arg1: i32, %arg2: memref<128x48xbf16, #tpu.memory_space<vmem>>, %arg3: memref<48x768xbf16, #tpu.memory_space<vmem>>, %arg4: memref<1x768xf32, #tpu.memory_space<vmem>>, %arg5: memref<128x768xf32, #tpu.memory_space<vmem>>) attributes {dimension_semantics = [#tpu.dimension_semantics<parallel>, #tpu.dimension_semantics<arbitrary>], iteration_bounds = array<i64: 1, 1>, scalar_prefetch = 0 : i64, scratch_operands = 0 : i64, tpu.core_type = #tpu.core_type<tc>, window_params = [{transform_indices = @transform_0, window_bounds = array<i64: 128, 48>}, {transform_indices = @transform_1, window_bounds = array<i64: 48, 768>}, {pipeline_mode = #tpu.pipeline_mode<synchronous>, transform_indices = @transform_2, window_bounds = array<i64: 1, 768>}, {transform_indices = @transform_3, window_bounds = array<i64: 128, 768>}]} {
    %c0 = arith.constant 0 : index
    %c0_0 = arith.constant 0 : index
    %0 = vector.load %arg2[%c0, %c0_0] : memref<128x48xbf16, #tpu.memory_space<vmem>>, vector<128x48xbf16>
    %c0_1 = arith.constant 0 : index
    %c0_2 = arith.constant 0 : index
    %1 = vector.load %arg3[%c0_1, %c0_2] : memref<48x768xbf16, #tpu.memory_space<vmem>>, vector<48x768xbf16>
    %cst = arith.constant dense<0.000000e+00> : vector<128x768xf32>
    %2 = tpu.matmul %0, %1, %cst {dimension_numbers = #tpu.dot_dimension_numbers<[1], [0], [0], [1], [0, 0, 1, 1], [], []>} : vector<128x48xbf16>, vector<48x768xbf16>, vector<128x768xf32> -> vector<128x768xf32>
    %c0_3 = arith.constant 0 : index
    %c0_4 = arith.constant 0 : index
    %3 = vector.load %arg4[%c0_3, %c0_4] : memref<1x768xf32, #tpu.memory_space<vmem>>, vector<1x768xf32>
    %4 = vector.broadcast %3 : vector<1x768xf32> to vector<128x768xf32>
    %5 = arith.addf %2, %4 : vector<128x768xf32>
    %c0_5 = arith.constant 0 : index
    %c0_6 = arith.constant 0 : index
    %6 = vector.load %arg5[%c0_5, %c0_6] : memref<128x768xf32, #tpu.memory_space<vmem>>, vector<128x768xf32>
    tpu.vector_store %arg5[%c0_5, %c0_6], %5 {strides = array<i32>} : memref<128x768xf32, #tpu.memory_space<vmem>>, vector<128x768xf32>,
    return
  }
  func.func @transform_0(%arg0: i32, %arg1: i32) -> (i32, i32) {
    %c0_i32 = arith.constant 0 : i32
    return %arg0, %arg1 : i32, i32
  }
  func.func @transform_1(%arg0: i32, %arg1: i32) -> (i32, i32) {
    %c0_i32 = arith.constant 0 : i32
    %c0_i32_0 = arith.constant 0 : i32
    return %arg1, %c0_i32 : i32, i32
  }
  func.func @transform_2(%arg0: i32, %arg1: i32) -> (i32, i32) {
    %c0_i32 = arith.constant 0 : i32
    %c0_i32_0 = arith.constant 0 : i32
    %c0_i32_1 = arith.constant 0 : i32
    return %c0_i32, %c0_i32_0 : i32, i32
  }
  func.func @transform_3(%arg0: i32, %arg1: i32) -> (i32, i32) {
    %c0_i32 = arith.constant 0 : i32
    %c0_i32_0 = arith.constant 0 : i32
    return %arg0, %c0_i32 : i32, i32
  }
}

</mosaic_0001>

<bundles_post_ra>
// kernel: tpu_custom_call.1
= control target key start
LH: loop header
LB: loop body
LE: loop exit
PB: predicated region body
PF: predicated region fallthrough
CT: control target
= control target key end

     0   :  { %8 = vsyncpa [#allocation3], 0  ;;  %s1082_s0 = inlined_call_operand.vmem [shape: bf16[128,48], index: 0, kind: input, shape index: {}]   ;;  %s1083_s1 = inlined_call_operand.hbm [shape: bf16[48,768], index: 1, kind: input, shape index: {}]   ;;  %s1084_s2 = inlined_call_operand.vmem [shape: f32[1,768], index: 2, kind: input, shape index: {}]   ;;  %s1085_s3 = inlined_call_operand.hbm [shape: f32[128,768], index: 3, kind: output, shape index: {}]  }
   0x1   :  { %9 = vsyncpa [#allocation4], 0  ;;  %s845_s12 = smov [#allocation2]  }
   0x2   :  { %s17_s13 = sshll.u32 %s845_s12, 4  ;;  %s18_s13 = int_to_ptr.vmem [resolvable:$true] %s17_s13 }
   0x3   :  { %s809_s14 = scalar_lea.vmem %s18_s13, 2304  ;;  %p814_p1 = scmp.lt.s32.totalorder %s18_s13, %s18_s13 }
   0x4   :  { %p810_p0 = scmp.ne.s32.totalorder %s18_s13, %s809_s14  ;;  %p815_p2 = scmp.lt.s32.totalorder %s809_s14, %s809_s14 }
   0x6   :  { %p816_p3 = por %p815_p2, %p814_p1 }
   0x8   :  { %p817_p4 = pnand %p816_p3, %p810_p0 }
   0xa   :  { %820 = shalt.err (!%p817_p4)
}
   0xb   :  { %s846_s15 = smov 384   ;;  %s847_s16 = smov 24  }
   0xc   :  { %23 = dma.hbm_to_vmem [thread:$0]  %s1083_s1, 2304, %s18_s13, [#allocation3], %s846_s15, %s846_s15, %s847_s16  }
   0xd   :  { %841 = dma.done.wait [#allocation3], 2304  }
   0xe   :  { %842 = vsyncadd [#allocation3], 4294964992  ;;  %v848_v0 = vmov 0   ;;  %v766_v1 = vld [vmem:[#allocation2 + $0x64] ss:$24 sps:$4 sm:$0xff]   ;;  %vm226_vm0 = vcmask 392192   ;;  %v66_v27 = vlaneseq }
   0xf   :  { %283 = vmatprep.mubr.bf16.mxu0 %v848_v0  ;;  %323 = vmatprep.mubr.bf16.mxu1 %v848_v0  ;;  %v768_v2 = vld [vmem:[#allocation2 + $0x60] ss:$24 sps:$4 sm:$0xff]   ;;  %v769_v3 = vld [vmem:[#allocation2 + $0x34] ss:$24 sps:$4 sm:$0xff]   ;;  %v771_v4 = vld [vmem:[#allocation2 + $0x30] ss:$24 sps:$4 sm:$0xff]  }
  0x10   :  { %261 = vmatprep.subr.bf16.mxu0 %v766_v1  ;;  %753 = vmatprep.subr.bf16.mxu1 %v766_v1  ;;  %v772_v5 = vld [vmem:[#allocation2 + $0x4] ss:$24 sps:$4 sm:$0xff]   ;;  %v774_v6 = vld [vmem:[#allocation2] ss:$24 sps:$4 sm:$0xff]   ;;  %v782_v8 = vld [vmem:[#allocation2 + $0x74] ss:$24 sps:$4 sm:$0xff]  }
  0x11   :  { %262 = vmatpush1.bf16.msra.mxu0 %v768_v2  ;;  %756 = vmatpush1.bf16.msra.mxu1 %v768_v2  ;;  %v779_v7 = vld [vmem:[#allocation2 + $0x6c] ss:$24 sps:$4 sm:$0xff]   ;;  %v777_v11 = vld [vmem:[#allocation2 + $0x68] ss:$24 sps:$4 sm:$0xff]   ;;  %v787_v13 = vld [vmem:[#allocation2 + $0x3c] ss:$24 sps:$4 sm:$0xff]  }
  0x12   :  { %263 = vmatprep.subr.bf16.mxu0 %v769_v3  ;;  %754 = vmatprep.subr.bf16.mxu1 %v769_v3  ;;  %v775_v9 = vld [vmem:[%s1082_s0] sm:$0xff]   ;;  %v780_v12 = vld [vmem:[#allocation2 + $0x70] ss:$24 sps:$4 sm:$0xff]   ;;  %v798_v19 = vld [vmem:[#allocation2 + $0x14] ss:$24 sps:$4 sm:$0xff]   ;;  %v952_v28 = vshrl.u32 %v66_v27, 7 }
  0x13   :  { %v883_v10 = vld [vmem:[%s1082_s0 + $0x20] sm:$0xff]   ;;  %v785_v15 = vld [vmem:[#allocation2 + $0x38] ss:$24 sps:$4 sm:$0xff]   ;;  %v783_v18 = vld [vmem:[%s1082_s0 + $0x8] sm:$0xff]  }
  0x14   :  { %v790_v14 = vld [vmem:[#allocation2 + $0x44] ss:$24 sps:$4 sm:$0xff]   ;;  %v788_v16 = vld [vmem:[#allocation2 + $0x40] ss:$24 sps:$4 sm:$0xff]   ;;  %v784_v20 = vld [vmem:[%s1082_s0 + $0x28] sm:$0xff]   ;;  %v68_v29 = vsub.s32 0, %v952_v28 }
  0x15   :  { %264 = vmatpush1.bf16.msra.mxu0 %v771_v4  ;;  %757 = vmatpush1.bf16.msra.mxu1 %v771_v4  ;;  %v795_v17 = vld [vmem:[#allocation2 + $0xc] ss:$24 sps:$4 sm:$0xff]   ;;  %v793_v21 = vld [vmem:[#allocation2 + $0x8] ss:$24 sps:$4 sm:$0xff]   ;;  %v791_v23 = vld [vmem:[%s1082_s0 + $0x10] sm:$0xff]   ;;  %v72_v31 = vsub.s32 1, %v952_v28 }
  0x16   :  { %265 = vmatprep.subr.bf16.mxu0 %v772_v5  ;;  %755 = vmatprep.subr.bf16.mxu1 %v772_v5  ;;  %v796_v22 = vld [vmem:[#allocation2 + $0x10] ss:$24 sps:$4 sm:$0xff]   ;;  %v799_v25 = vld [vmem:[%s1082_s0 + $0x18] sm:$0xff]   ;;  %v958_v30 = vld [vmem:[%s1084_s2] sm:$0x3f]  ;;  %s849_s2 = smov [#allocation5]  }
  0x17   :  { %v792_v24 = vld [vmem:[%s1082_s0 + $0x30] sm:$0xff]   ;;  %v800_v26 = vld [vmem:[%s1082_s0 + $0x38] sm:$0xff]   ;;  %v962_v32 = vrot.slane %v958_v30, %v68_v29  ;;  %v965_v33 = vrot.slane %v958_v30, %v72_v31  ;;  %v80_v29 = vsub.s32 3, %v952_v28  ;;  %v88_v31 = vsub.s32 5, %v952_v28  ;;  %s691_s8 = sshll.u32 %s849_s2, 4  ;;  %s692_s8 = int_to_ptr.vmem [resolvable:$true] %s691_s8 }
  0x18   :  { %s821_s9 = scalar_lea.vmem %s692_s8, 12288  ;;  %p826_p6 = scmp.lt.s32.totalorder %s692_s8, %s692_s8 }
  0x19   :  { %266 = vmatpush1.bf16.msra.mxu0 %v774_v6  ;;  %758 = vmatpush1.bf16.msra.mxu1 %v774_v6  ;;  %p822_p5 = scmp.ne.s32.totalorder %s692_s8, %s821_s9  ;;  %p827_p7 = scmp.lt.s32.totalorder %s821_s9, %s821_s9 }
  0x1a   :  { %374 = vmatprep.subr.bf16.mxu1 %v779_v7  ;;  %487 = vmatprep.subr.bf16.mxu0 %v782_v8 }
  0x1b   :  { %p828_p8 = por %p827_p7, %p826_p6 }
  0x1c   :  { %729 = vmatmul.mubr.msk.bf16.vlgmr.msra.gmra.mxu0 %vm226_vm0, %v775_v9  ;;  %733 = vmatmul.mubr.msk.bf16.vlgmr.msra.gmra.mxu1 %vm226_vm0, %v883_v10 }
  0x1d   :  { %375 = vmatpush1.bf16.msra.mxu1 %v777_v11  ;;  %488 = vmatpush1.bf16.msra.mxu0 %v780_v12  ;;  %p829_p9 = pnand %p828_p8, %p822_p5 }
  0x1e   :  { %293 = vmatprep.mubr.bf16.mxu0 %v848_v0  ;;  %333 = vmatprep.mubr.bf16.mxu1 %v848_v0 }
  0x1f   :  { %376 = vmatprep.subr.bf16.mxu1 %v787_v13  ;;  %489 = vmatprep.subr.bf16.mxu0 %v790_v14 }
  0x21   :  { %377 = vmatpush1.bf16.msra.mxu1 %v785_v15  ;;  %490 = vmatpush1.bf16.msra.mxu0 %v788_v16 }
  0x22   :  { %378 = vmatprep.subr.bf16.mxu1 %v795_v17  ;;  %491 = vmatprep.subr.bf16.mxu0 %v798_v19 }
  0x24   :  { %730 = vmatmul.mubr.msk.bf16.gmra.mxu0 %vm226_vm0, %v783_v18  ;;  %734 = vmatmul.mubr.msk.bf16.gmra.mxu1 %vm226_vm0, %v784_v20 }
  0x25   :  { %303 = vmatprep.mubr.bf16.mxu0 %v848_v0  ;;  %343 = vmatprep.mubr.bf16.mxu1 %v848_v0 }
  0x26   :  { %379 = vmatpush1.bf16.msra.mxu1 %v793_v21  ;;  %492 = vmatpush1.bf16.msra.mxu0 %v796_v22  ;;  %v76_v22 = vsub.s32 2, %v952_v28 }
  0x2c   :  { %731 = vmatmul.mubr.msk.bf16.gmra.mxu0 %vm226_vm0, %v791_v23  ;;  %735 = vmatmul.mubr.msk.bf16.gmra.mxu1 %vm226_vm0, %v792_v24 }
  0x2d   :  { %313 = vmatprep.mubr.bf16.mxu0 %v848_v0  ;;  %353 = vmatprep.mubr.bf16.mxu1 %v848_v0 }
  0x34   :  { %732 = vmatmul.mubr.msk.bf16.gmra.mxu0 %vm226_vm0, %v799_v25  ;;  %736 = vmatmul.mubr.msk.bf16.gmra.mxu1 %vm226_vm0, %v800_v26 }
  0x35   :  { %396 = vmatprep.mubr.bf16.mxu1 %v848_v0  ;;  %509 = vmatprep.mubr.bf16.mxu0 %v848_v0 }
  0x3c   :  { %737 = vmatmul.mubr.msk.bf16.vlgmr.msra.gmra.mxu1 %vm226_vm0, %v775_v9  ;;  %745 = vmatmul.mubr.msk.bf16.vlgmr.msra.gmra.mxu0 %vm226_vm0, %v775_v9 }
  0x3d   :  { %406 = vmatprep.mubr.bf16.mxu1 %v848_v0  ;;  %519 = vmatprep.mubr.bf16.mxu0 %v848_v0 }
  0x44   :  { %738 = vmatmul.mubr.msk.bf16.gmra.mxu1 %vm226_vm0, %v783_v18  ;;  %746 = vmatmul.mubr.msk.bf16.gmra.mxu0 %vm226_vm0, %v783_v18 }
  0x45   :  { %416 = vmatprep.mubr.bf16.mxu1 %v848_v0  ;;  %529 = vmatprep.mubr.bf16.mxu0 %v848_v0 }
  0x4c   :  { %739 = vmatmul.mubr.msk.bf16.gmra.mxu1 %vm226_vm0, %v791_v23  ;;  %747 = vmatmul.mubr.msk.bf16.gmra.mxu0 %vm226_vm0, %v791_v23  ;;  %v84_v23 = vsub.s32 4, %v952_v28 }
  0x4d   :  { %426 = vmatprep.mubr.bf16.mxu1 %v848_v0  ;;  %539 = vmatprep.mubr.bf16.mxu0 %v848_v0 }
  0x54   :  { %740 = vmatmul.mubr.msk.bf16.gmra.mxu1 %vm226_vm0, %v799_v25  ;;  %748 = vmatmul.mubr.msk.bf16.gmra.mxu0 %vm226_vm0, %v799_v25 }
  0x55   :  { %436 = vmatprep.mubr.bf16.mxu1 %v848_v0  ;;  %549 = vmatprep.mubr.bf16.mxu0 %v848_v0 }
  0x5c   :  { %741 = vmatmul.mubr.msk.bf16.gmra.mxu1 %vm226_vm0, %v883_v10  ;;  %749 = vmatmul.mubr.msk.bf16.gmra.mxu0 %vm226_vm0, %v883_v10 }
  0x5d   :  { %446 = vmatprep.mubr.bf16.mxu1 %v848_v0  ;;  %559 = vmatprep.mubr.bf16.mxu0 %v848_v0 }
  0x64   :  { %742 = vmatmul.mubr.msk.bf16.gmra.mxu1 %vm226_vm0, %v784_v20  ;;  %750 = vmatmul.mubr.msk.bf16.gmra.mxu0 %vm226_vm0, %v784_v20 }
  0x65   :  { %456 = vmatprep.mubr.bf16.mxu1 %v848_v0  ;;  %569 = vmatprep.mubr.bf16.mxu0 %v848_v0 }
  0x6c   :  { %743 = vmatmul.mubr.msk.bf16.gmra.mxu1 %vm226_vm0, %v792_v24  ;;  %751 = vmatmul.mubr.msk.bf16.gmra.mxu0 %vm226_vm0, %v792_v24 }
  0x6d   :  { %466 = vmatprep.mubr.bf16.mxu1 %v848_v0  ;;  %579 = vmatprep.mubr.bf16.mxu0 %v848_v0 }
  0x74   :  { %744 = vmatmul.mubr.msk.bf16.gmra.mxu1 %vm226_vm0, %v800_v26  ;;  %752 = vmatmul.mubr.msk.bf16.gmra.mxu0 %vm226_vm0, %v800_v26 }
  0xdc   :  { %v285_v34 = vpop.f32.mrf.mxu0  ;;  %v325_v35 = vpop.f32.mrf.mxu1 }
  0xdd   :  { %v286_v36 = vadd.f32 %v285_v34, %v962_v32  ;;  %v326_v37 = vadd.f32 %v325_v35, %v962_v32 }
  0xde   :  { %v287_v38 = vpop.f32.mrf.mxu0  ;;  %v327_v39 = vpop.f32.mrf.mxu1 }
  0xdf   :  { %590 = vst [vmem:[#allocation5] sm:$0xff] %v286_v36  ;;  %638 = vst [vmem:[#allocation5 + $0x180] sm:$0xff] %v326_v37  ;;  %v288_v40 = vadd.f32 %v287_v38, %v965_v33  ;;  %v328_v41 = vadd.f32 %v327_v39, %v965_v33  ;;  %v1002_v38 = vrot.slane %v958_v30, %v76_v22 }
  0xe0   :  { %v289_v42 = vpop.f32.mrf.mxu0  ;;  %v329_v43 = vpop.f32.mrf.mxu1  ;;  %v1005_v39 = vrot.slane %v958_v30, %v84_v23 }
  0xe1   :  { %591 = vst [vmem:[#allocation5 + $0x8] sm:$0xff] %v288_v40  ;;  %639 = vst [vmem:[#allocation5 + $0x188] sm:$0xff] %v328_v41  ;;  %v290_v44 = vadd.f32 %v289_v42, %v962_v32  ;;  %v330_v45 = vadd.f32 %v329_v43, %v962_v32  ;;  %v1010_v43 = vrot.slane %v958_v30, %v80_v29 }
  0xe2   :  { %v291_v46 = vpop.f32.mrf.mxu0  ;;  %v331_v47 = vpop.f32.mrf.mxu1 }
  0xe3   :  { %596 = vst [vmem:[#allocation5 + $0x30] sm:$0xff] %v290_v44  ;;  %644 = vst [vmem:[#allocation5 + $0x1b0] sm:$0xff] %v330_v45  ;;  %v292_v48 = vadd.f32 %v291_v46, %v965_v33  ;;  %v332_v49 = vadd.f32 %v331_v47, %v965_v33  ;;  %v1013_v44 = vrot.slane %v958_v30, %v88_v31 }
  0xe4   :  { %v295_v50 = vpop.f32.mrf.mxu0  ;;  %v335_v51 = vpop.f32.mrf.mxu1 }
  0xe5   :  { %597 = vst [vmem:[#allocation5 + $0x38] sm:$0xff] %v292_v48  ;;  %645 = vst [vmem:[#allocation5 + $0x1b8] sm:$0xff] %v332_v49  ;;  %v296_v52 = vadd.f32 %v295_v50, %v962_v32  ;;  %v336_v53 = vadd.f32 %v335_v51, %v962_v32 }
  0xe6   :  { %v297_v54 = vpop.f32.mrf.mxu0  ;;  %v337_v55 = vpop.f32.mrf.mxu1 }
  0xe7   :  { %602 = vst [vmem:[#allocation5 + $0x60] sm:$0xff] %v296_v52  ;;  %650 = vst [vmem:[#allocation5 + $0x1e0] sm:$0xff] %v336_v53  ;;  %v298_v56 = vadd.f32 %v297_v54, %v965_v33  ;;  %v338_v57 = vadd.f32 %v337_v55, %v965_v33 }
  0xe8   :  { %v299_v58 = vpop.f32.mrf.mxu0  ;;  %v339_v59 = vpop.f32.mrf.mxu1 }
  0xe9   :  { %603 = vst [vmem:[#allocation5 + $0x68] sm:$0xff] %v298_v56  ;;  %651 = vst [vmem:[#allocation5 + $0x1e8] sm:$0xff] %v338_v57  ;;  %v300_v60 = vadd.f32 %v299_v58, %v962_v32  ;;  %v340_v61 = vadd.f32 %v339_v59, %v962_v32 }
  0xea   :  { %v301_v62 = vpop.f32.mrf.mxu0  ;;  %v341_v63 = vpop.f32.mrf.mxu1 }
  0xeb   :  { %608 = vst [vmem:[#allocation5 + $0x90] sm:$0xff] %v300_v60  ;;  %656 = vst [vmem:[#allocation5 + $0x210] sm:$0xff] %v340_v61  ;;  %v302_v0 = vadd.f32 %v301_v62, %v965_v33  ;;  %v342_v1 = vadd.f32 %v341_v63, %v965_v33 }
  0xec   :  { %v305_v2 = vpop.f32.mrf.mxu0  ;;  %v345_v3 = vpop.f32.mrf.mxu1 }
  0xed   :  { %609 = vst [vmem:[#allocation5 + $0x98] sm:$0xff] %v302_v0  ;;  %657 = vst [vmem:[#allocation5 + $0x218] sm:$0xff] %v342_v1  ;;  %v306_v4 = vadd.f32 %v305_v2, %v962_v32  ;;  %v346_v5 = vadd.f32 %v345_v3, %v962_v32 }
  0xee   :  { %v307_v6 = vpop.f32.mrf.mxu0  ;;  %v347_v7 = vpop.f32.mrf.mxu1 }
  0xef   :  { %614 = vst [vmem:[#allocation5 + $0xc0] sm:$0xff] %v306_v4  ;;  %662 = vst [vmem:[#allocation5 + $0x240] sm:$0xff] %v346_v5  ;;  %v308_v8 = vadd.f32 %v307_v6, %v965_v33  ;;  %v348_v9 = vadd.f32 %v347_v7, %v965_v33 }
  0xf0   :  { %v309_v10 = vpop.f32.mrf.mxu0  ;;  %v349_v11 = vpop.f32.mrf.mxu1 }
  0xf1   :  { %615 = vst [vmem:[#allocation5 + $0xc8] sm:$0xff] %v308_v8  ;;  %663 = vst [vmem:[#allocation5 + $0x248] sm:$0xff] %v348_v9  ;;  %v310_v12 = vadd.f32 %v309_v10, %v962_v32  ;;  %v350_v13 = vadd.f32 %v349_v11, %v962_v32 }
  0xf2   :  { %v311_v14 = vpop.f32.mrf.mxu0  ;;  %v351_v15 = vpop.f32.mrf.mxu1 }
  0xf3   :  { %620 = vst [vmem:[#allocation5 + $0xf0] sm:$0xff] %v310_v12  ;;  %668 = vst [vmem:[#allocation5 + $0x270] sm:$0xff] %v350_v13  ;;  %v312_v16 = vadd.f32 %v311_v14, %v965_v33  ;;  %v352_v17 = vadd.f32 %v351_v15, %v965_v33 }
  0xf4   :  { %v315_v18 = vpop.f32.mrf.mxu0  ;;  %v355_v19 = vpop.f32.mrf.mxu1 }
  0xf5   :  { %621 = vst [vmem:[#allocation5 + $0xf8] sm:$0xff] %v312_v16  ;;  %669 = vst [vmem:[#allocation5 + $0x278] sm:$0xff] %v352_v17  ;;  %v316_v20 = vadd.f32 %v315_v18, %v962_v32  ;;  %v356_v21 = vadd.f32 %v355_v19, %v962_v32 }
  0xf6   :  { %v317_v24 = vpop.f32.mrf.mxu0  ;;  %v357_v25 = vpop.f32.mrf.mxu1 }
  0xf7   :  { %626 = vst [vmem:[#allocation5 + $0x120] sm:$0xff] %v316_v20  ;;  %674 = vst [vmem:[#allocation5 + $0x2a0] sm:$0xff] %v356_v21  ;;  %v318_v26 = vadd.f32 %v317_v24, %v965_v33  ;;  %v358_v27 = vadd.f32 %v357_v25, %v965_v33 }
  0xf8   :  { %v319_v34 = vpop.f32.mrf.mxu0  ;;  %v359_v35 = vpop.f32.mrf.mxu1 }
  0xf9   :  { %627 = vst [vmem:[#allocation5 + $0x128] sm:$0xff] %v318_v26  ;;  %675 = vst [vmem:[#allocation5 + $0x2a8] sm:$0xff] %v358_v27  ;;  %v320_v36 = vadd.f32 %v319_v34, %v962_v32  ;;  %v360_v37 = vadd.f32 %v359_v35, %v962_v32 }
  0xfa   :  { %v321_v40 = vpop.f32.mrf.mxu0  ;;  %v361_v41 = vpop.f32.mrf.mxu1 }
  0xfb   :  { %632 = vst [vmem:[#allocation5 + $0x150] sm:$0xff] %v320_v36  ;;  %680 = vst [vmem:[#allocation5 + $0x2d0] sm:$0xff] %v360_v37  ;;  %v322_v28 = vadd.f32 %v321_v40, %v965_v33  ;;  %v362_v42 = vadd.f32 %v361_v41, %v965_v33 }
  0xfc   :  { %v398_v32 = vpop.f32.mrf.mxu1  ;;  %v511_v45 = vpop.f32.mrf.mxu0 }
  0xfd   :  { %633 = vst [vmem:[#allocation5 + $0x158] sm:$0xff] %v322_v28  ;;  %681 = vst [vmem:[#allocation5 + $0x2d8] sm:$0xff] %v362_v42  ;;  %v399_v46 = vadd.f32 %v398_v32, %v1002_v38  ;;  %v512_v47 = vadd.f32 %v511_v45, %v1005_v39 }
  0xfe   :  { %v400_v48 = vpop.f32.mrf.mxu1  ;;  %v513_v49 = vpop.f32.mrf.mxu0 }
  0xff   :  { %592 = vst [vmem:[#allocation5 + $0x10] sm:$0xff] %v399_v46  ;;  %594 = vst [vmem:[#allocation5 + $0x20] sm:$0xff] %v512_v47  ;;  %v401_v33 = vadd.f32 %v400_v48, %v1010_v43  ;;  %v514_v50 = vadd.f32 %v513_v49, %v1013_v44 }
 0x100   :  { %v402_v51 = vpop.f32.mrf.mxu1  ;;  %v515_v52 = vpop.f32.mrf.mxu0 }
 0x101   :  { %593 = vst [vmem:[#allocation5 + $0x18] sm:$0xff] %v401_v33  ;;  %595 = vst [vmem:[#allocation5 + $0x28] sm:$0xff] %v514_v50  ;;  %v403_v30 = vadd.f32 %v402_v51, %v1002_v38  ;;  %v516_v53 = vadd.f32 %v515_v52, %v1005_v39 }
 0x102   :  { %v404_v54 = vpop.f32.mrf.mxu1  ;;  %v517_v55 = vpop.f32.mrf.mxu0 }
 0x103   :  { %598 = vst [vmem:[#allocation5 + $0x40] sm:$0xff] %v403_v30  ;;  %600 = vst [vmem:[#allocation5 + $0x50] sm:$0xff] %v516_v53  ;;  %v405_v56 = vadd.f32 %v404_v54, %v1010_v43  ;;  %v518_v57 = vadd.f32 %v517_v55, %v1013_v44 }
 0x104   :  { %v408_v58 = vpop.f32.mrf.mxu1  ;;  %v521_v59 = vpop.f32.mrf.mxu0 }
 0x105   :  { %599 = vst [vmem:[#allocation5 + $0x48] sm:$0xff] %v405_v56  ;;  %601 = vst [vmem:[#allocation5 + $0x58] sm:$0xff] %v518_v57  ;;  %v409_v60 = vadd.f32 %v408_v58, %v1002_v38  ;;  %v522_v61 = vadd.f32 %v521_v59, %v1005_v39 }
 0x106   :  { %v410_v62 = vpop.f32.mrf.mxu1  ;;  %v523_v63 = vpop.f32.mrf.mxu0 }
 0x107   :  { %604 = vst [vmem:[#allocation5 + $0x70] sm:$0xff] %v409_v60  ;;  %606 = vst [vmem:[#allocation5 + $0x80] sm:$0xff] %v522_v61  ;;  %v411_v0 = vadd.f32 %v410_v62, %v1010_v43  ;;  %v524_v1 = vadd.f32 %v523_v63, %v1013_v44 }
 0x108   :  { %v412_v2 = vpop.f32.mrf.mxu1  ;;  %v525_v3 = vpop.f32.mrf.mxu0 }
 0x109   :  { %605 = vst [vmem:[#allocation5 + $0x78] sm:$0xff] %v411_v0  ;;  %607 = vst [vmem:[#allocation5 + $0x88] sm:$0xff] %v524_v1  ;;  %v413_v4 = vadd.f32 %v412_v2, %v1002_v38  ;;  %v526_v5 = vadd.f32 %v525_v3, %v1005_v39 }
 0x10a   :  { %v414_v6 = vpop.f32.mrf.mxu1  ;;  %v527_v7 = vpop.f32.mrf.mxu0 }
 0x10b   :  { %610 = vst [vmem:[#allocation5 + $0xa0] sm:$0xff] %v413_v4  ;;  %612 = vst [vmem:[#allocation5 + $0xb0] sm:$0xff] %v526_v5  ;;  %v415_v8 = vadd.f32 %v414_v6, %v1010_v43  ;;  %v528_v9 = vadd.f32 %v527_v7, %v1013_v44 }
 0x10c   :  { %v418_v10 = vpop.f32.mrf.mxu1  ;;  %v531_v11 = vpop.f32.mrf.mxu0 }
 0x10d   :  { %611 = vst [vmem:[#allocation5 + $0xa8] sm:$0xff] %v415_v8  ;;  %613 = vst [vmem:[#allocation5 + $0xb8] sm:$0xff] %v528_v9  ;;  %v419_v12 = vadd.f32 %v418_v10, %v1002_v38  ;;  %v532_v13 = vadd.f32 %v531_v11, %v1005_v39 }
 0x10e   :  { %v420_v14 = vpop.f32.mrf.mxu1  ;;  %v533_v15 = vpop.f32.mrf.mxu0 }
 0x10f   :  { %616 = vst [vmem:[#allocation5 + $0xd0] sm:$0xff] %v419_v12  ;;  %618 = vst [vmem:[#allocation5 + $0xe0] sm:$0xff] %v532_v13  ;;  %v421_v16 = vadd.f32 %v420_v14, %v1010_v43  ;;  %v534_v17 = vadd.f32 %v533_v15, %v1013_v44 }
 0x110   :  { %v422_v18 = vpop.f32.mrf.mxu1  ;;  %v535_v19 = vpop.f32.mrf.mxu0 }
 0x111   :  { %617 = vst [vmem:[#allocation5 + $0xd8] sm:$0xff] %v421_v16  ;;  %619 = vst [vmem:[#allocation5 + $0xe8] sm:$0xff] %v534_v17  ;;  %v423_v20 = vadd.f32 %v422_v18, %v1002_v38  ;;  %v536_v21 = vadd.f32 %v535_v19, %v1005_v39 }
 0x112   :  { %v424_v22 = vpop.f32.mrf.mxu1  ;;  %v537_v23 = vpop.f32.mrf.mxu0 }
 0x113   :  { %622 = vst [vmem:[#allocation5 + $0x100] sm:$0xff] %v423_v20  ;;  %624 = vst [vmem:[#allocation5 + $0x110] sm:$0xff] %v536_v21  ;;  %v425_v24 = vadd.f32 %v424_v22, %v1010_v43  ;;  %v538_v25 = vadd.f32 %v537_v23, %v1013_v44 }
 0x114   :  { %v428_v26 = vpop.f32.mrf.mxu1  ;;  %v541_v27 = vpop.f32.mrf.mxu0 }
 0x115   :  { %623 = vst [vmem:[#allocation5 + $0x108] sm:$0xff] %v425_v24  ;;  %625 = vst [vmem:[#allocation5 + $0x118] sm:$0xff] %v538_v25  ;;  %v429_v29 = vadd.f32 %v428_v26, %v1002_v38  ;;  %v542_v31 = vadd.f32 %v541_v27, %v1005_v39 }
 0x116   :  { %v430_v34 = vpop.f32.mrf.mxu1  ;;  %v543_v35 = vpop.f32.mrf.mxu0 }
 0x117   :  { %628 = vst [vmem:[#allocation5 + $0x130] sm:$0xff] %v429_v29  ;;  %630 = vst [vmem:[#allocation5 + $0x140] sm:$0xff] %v542_v31  ;;  %v431_v36 = vadd.f32 %v430_v34, %v1010_v43  ;;  %v544_v37 = vadd.f32 %v543_v35, %v1013_v44 }
 0x118   :  { %v432_v40 = vpop.f32.mrf.mxu1  ;;  %v545_v41 = vpop.f32.mrf.mxu0 }
 0x119   :  { %629 = vst [vmem:[#allocation5 + $0x138] sm:$0xff] %v431_v36  ;;  %631 = vst [vmem:[#allocation5 + $0x148] sm:$0xff] %v544_v37  ;;  %v433_v28 = vadd.f32 %v432_v40, %v1002_v38  ;;  %v546_v42 = vadd.f32 %v545_v41, %v1005_v39 }
 0x11a   :  { %v434_v32 = vpop.f32.mrf.mxu1  ;;  %v547_v45 = vpop.f32.mrf.mxu0 }
 0x11b   :  { %634 = vst [vmem:[#allocation5 + $0x160] sm:$0xff] %v433_v28  ;;  %636 = vst [vmem:[#allocation5 + $0x170] sm:$0xff] %v546_v42  ;;  %v435_v46 = vadd.f32 %v434_v32, %v1010_v43  ;;  %v548_v47 = vadd.f32 %v547_v45, %v1013_v44 }
 0x11c   :  { %v438_v48 = vpop.f32.mrf.mxu1  ;;  %v551_v49 = vpop.f32.mrf.mxu0 }
 0x11d   :  { %635 = vst [vmem:[#allocation5 + $0x168] sm:$0xff] %v435_v46  ;;  %637 = vst [vmem:[#allocation5 + $0x178] sm:$0xff] %v548_v47  ;;  %v439_v33 = vadd.f32 %v438_v48, %v1002_v38  ;;  %v552_v50 = vadd.f32 %v551_v49, %v1005_v39 }
 0x11e   :  { %v440_v51 = vpop.f32.mrf.mxu1  ;;  %v553_v52 = vpop.f32.mrf.mxu0 }
 0x11f   :  { %640 = vst [vmem:[#allocation5 + $0x190] sm:$0xff] %v439_v33  ;;  %642 = vst [vmem:[#allocation5 + $0x1a0] sm:$0xff] %v552_v50  ;;  %v441_v30 = vadd.f32 %v440_v51, %v1010_v43  ;;  %v554_v53 = vadd.f32 %v553_v52, %v1013_v44 }
 0x120   :  { %v442_v54 = vpop.f32.mrf.mxu1  ;;  %v555_v55 = vpop.f32.mrf.mxu0 }
 0x121   :  { %641 = vst [vmem:[#allocation5 + $0x198] sm:$0xff] %v441_v30  ;;  %643 = vst [vmem:[#allocation5 + $0x1a8] sm:$0xff] %v554_v53  ;;  %v443_v56 = vadd.f32 %v442_v54, %v1002_v38  ;;  %v556_v57 = vadd.f32 %v555_v55, %v1005_v39 }
 0x122   :  { %v444_v58 = vpop.f32.mrf.mxu1  ;;  %v557_v59 = vpop.f32.mrf.mxu0 }
 0x123   :  { %646 = vst [vmem:[#allocation5 + $0x1c0] sm:$0xff] %v443_v56  ;;  %648 = vst [vmem:[#allocation5 + $0x1d0] sm:$0xff] %v556_v57  ;;  %v445_v60 = vadd.f32 %v444_v58, %v1010_v43  ;;  %v558_v61 = vadd.f32 %v557_v59, %v1013_v44 }
 0x124   :  { %v448_v62 = vpop.f32.mrf.mxu1  ;;  %v561_v63 = vpop.f32.mrf.mxu0 }
 0x125   :  { %647 = vst [vmem:[#allocation5 + $0x1c8] sm:$0xff] %v445_v60  ;;  %649 = vst [vmem:[#allocation5 + $0x1d8] sm:$0xff] %v558_v61  ;;  %v449_v0 = vadd.f32 %v448_v62, %v1002_v38  ;;  %v562_v1 = vadd.f32 %v561_v63, %v1005_v39 }
 0x126   :  { %v450_v2 = vpop.f32.mrf.mxu1  ;;  %v563_v3 = vpop.f32.mrf.mxu0 }
 0x127   :  { %652 = vst [vmem:[#allocation5 + $0x1f0] sm:$0xff] %v449_v0  ;;  %654 = vst [vmem:[#allocation5 + $0x200] sm:$0xff] %v562_v1  ;;  %v451_v4 = vadd.f32 %v450_v2, %v1010_v43  ;;  %v564_v5 = vadd.f32 %v563_v3, %v1013_v44 }
 0x128   :  { %v452_v6 = vpop.f32.mrf.mxu1  ;;  %v565_v7 = vpop.f32.mrf.mxu0 }
 0x129   :  { %653 = vst [vmem:[#allocation5 + $0x1f8] sm:$0xff] %v451_v4  ;;  %655 = vst [vmem:[#allocation5 + $0x208] sm:$0xff] %v564_v5  ;;  %v453_v8 = vadd.f32 %v452_v6, %v1002_v38  ;;  %v566_v9 = vadd.f32 %v565_v7, %v1005_v39 }
 0x12a   :  { %v454_v10 = vpop.f32.mrf.mxu1  ;;  %v567_v11 = vpop.f32.mrf.mxu0 }
 0x12b   :  { %658 = vst [vmem:[#allocation5 + $0x220] sm:$0xff] %v453_v8  ;;  %660 = vst [vmem:[#allocation5 + $0x230] sm:$0xff] %v566_v9  ;;  %v455_v12 = vadd.f32 %v454_v10, %v1010_v43  ;;  %v568_v13 = vadd.f32 %v567_v11, %v1013_v44 }
 0x12c   :  { %v458_v14 = vpop.f32.mrf.mxu1  ;;  %v571_v15 = vpop.f32.mrf.mxu0 }
 0x12d   :  { %659 = vst [vmem:[#allocation5 + $0x228] sm:$0xff] %v455_v12  ;;  %661 = vst [vmem:[#allocation5 + $0x238] sm:$0xff] %v568_v13  ;;  %v459_v16 = vadd.f32 %v458_v14, %v1002_v38  ;;  %v572_v17 = vadd.f32 %v571_v15, %v1005_v39 }
 0x12e   :  { %v460_v18 = vpop.f32.mrf.mxu1  ;;  %v573_v19 = vpop.f32.mrf.mxu0 }
 0x12f   :  { %664 = vst [vmem:[#allocation5 + $0x250] sm:$0xff] %v459_v16  ;;  %666 = vst [vmem:[#allocation5 + $0x260] sm:$0xff] %v572_v17  ;;  %v461_v20 = vadd.f32 %v460_v18, %v1010_v43  ;;  %v574_v21 = vadd.f32 %v573_v19, %v1013_v44 }
 0x130   :  { %v462_v22 = vpop.f32.mrf.mxu1  ;;  %v575_v23 = vpop.f32.mrf.mxu0 }
 0x131   :  { %665 = vst [vmem:[#allocation5 + $0x258] sm:$0xff] %v461_v20  ;;  %667 = vst [vmem:[#allocation5 + $0x268] sm:$0xff] %v574_v21  ;;  %v463_v24 = vadd.f32 %v462_v22, %v1002_v38  ;;  %v576_v25 = vadd.f32 %v575_v23, %v1005_v39 }
 0x132   :  { %v464_v26 = vpop.f32.mrf.mxu1  ;;  %v577_v27 = vpop.f32.mrf.mxu0 }
 0x133   :  { %670 = vst [vmem:[#allocation5 + $0x280] sm:$0xff] %v463_v24  ;;  %672 = vst [vmem:[#allocation5 + $0x290] sm:$0xff] %v576_v25  ;;  %v465_v29 = vadd.f32 %v464_v26, %v1010_v43  ;;  %v578_v31 = vadd.f32 %v577_v27, %v1013_v44 }
 0x134   :  { %v468_v34 = vpop.f32.mrf.mxu1  ;;  %v581_v35 = vpop.f32.mrf.mxu0 }
 0x135   :  { %671 = vst [vmem:[#allocation5 + $0x288] sm:$0xff] %v465_v29  ;;  %673 = vst [vmem:[#allocation5 + $0x298] sm:$0xff] %v578_v31  ;;  %v469_v36 = vadd.f32 %v468_v34, %v1002_v38  ;;  %v582_v37 = vadd.f32 %v581_v35, %v1005_v39 }
 0x136   :  { %v470_v40 = vpop.f32.mrf.mxu1  ;;  %v583_v41 = vpop.f32.mrf.mxu0 }
 0x137   :  { %676 = vst [vmem:[#allocation5 + $0x2b0] sm:$0xff] %v469_v36  ;;  %678 = vst [vmem:[#allocation5 + $0x2c0] sm:$0xff] %v582_v37  ;;  %v471_v28 = vadd.f32 %v470_v40, %v1010_v43  ;;  %v584_v42 = vadd.f32 %v583_v41, %v1013_v44 }
 0x138   :  { %v472_v32 = vpop.f32.mrf.mxu1  ;;  %v585_v45 = vpop.f32.mrf.mxu0 }
 0x139   :  { %677 = vst [vmem:[#allocation5 + $0x2b8] sm:$0xff] %v471_v28  ;;  %679 = vst [vmem:[#allocation5 + $0x2c8] sm:$0xff] %v584_v42  ;;  %v473_v46 = vadd.f32 %v472_v32, %v1002_v38  ;;  %v586_v47 = vadd.f32 %v585_v45, %v1005_v39 }
 0x13a   :  { %v474_v48 = vpop.f32.mrf.mxu1  ;;  %v587_v49 = vpop.f32.mrf.mxu0 }
 0x13b   :  { %682 = vst [vmem:[#allocation5 + $0x2e0] sm:$0xff] %v473_v46  ;;  %684 = vst [vmem:[#allocation5 + $0x2f0] sm:$0xff] %v586_v47  ;;  %v475_v33 = vadd.f32 %v474_v48, %v1010_v43  ;;  %v588_v50 = vadd.f32 %v587_v49, %v1013_v44 }
 0x13d   :  { %683 = vst [vmem:[#allocation5 + $0x2e8] sm:$0xff] %v475_v33  ;;  %685 = vst [vmem:[#allocation5 + $0x2f8] sm:$0xff] %v588_v50 }
 0x13e   :  { %832 = shalt.err (!%p829_p9)
}
 0x13f   :  { %s850_s10 = smov 768   ;;  %s851_s11 = smov 48  }
 0x140   :  { %697 = dma.vmem_to_hbm [thread:$0]  %s692_s8, 12288, %s1085_s3, [#allocation4], %s850_s10, %s850_s10, %s851_s11  }
 0x141   :  { %843 = dma.done.wait [#allocation4], 12288  }
 0x142   :  { %844 = vsyncadd [#allocation4], 4294955008 }
 0x143   :  { %701 = vsyncpa [#allocation3], 1 }
 0x144   :  { %702 = vsyncpa [#allocation4], 1 }

</bundles_post_ra>
